<compile_context>
chip_gen: v5e
topology: v5e:2x2
jax: 0.10.0
libtpu: 0.0.40
codegen_flags: <defaults>
</compile_context>

<pallas_src>
import jax
import jax.numpy as jnp
from jax.experimental import pallas as pl
from jax.experimental.pallas import tpu as pltpu


def _round_up(x, m):
    return (x + m - 1) // m * m


def _matmul_bias_kernel(x_ref, r_ref, rlast_ref, o_ref, acc_ref):
    """Produces one (tm, tn) output tile; K (axis 2) is the reduction axis."""
    k = pl.program_id(2)

    @pl.when(k == 0)
    def _init():
        # Seed the accumulator with the rank-1 bias term (bias * R[D, :]),
        # broadcast across the tm rows of this tile.  For the bias == 0 path
        # rlast is all zeros, so this is just a zero-init.
        acc_ref[...] = jnp.broadcast_to(
            rlast_ref[...].astype(jnp.float32), acc_ref.shape
        )

    acc_ref[...] += jnp.dot(
        x_ref[...], r_ref[...], preferred_element_type=jnp.float32
    )

    @pl.when(k == pl.num_programs(2) - 1)
    def _finalize():
        o_ref[...] = acc_ref[...].astype(o_ref.dtype)


def _pick_tiles(n, k, m):
    # Sized so (double-buffered x + R tiles) + f32 accumulator + output tile
    # stay well under the smallest default scoped-VMEM limit (16 MiB on v5e;
    # plenty of headroom on v6e / v7x): ~3 MiB total at 256/256/512.
    tm = min(256, _round_up(n, 8))
    tn = min(256, _round_up(m, 128))   # lane-dense output stores
    tk = min(512, _round_up(k, 128))
    return tm, tn, tk


def _pallas_matmul_bias(x, r_main, r_last, out_dtype):
    n, k = x.shape
    _, m = r_main.shape
    tm, tn, tk = _pick_tiles(n, k, m)

    # Pad operands to exact tile multiples.
    n_p, k_p, m_p = _round_up(n, tm), _round_up(k, tk), _round_up(m, tn)
    if (n_p, k_p) != (n, k):
        x = jnp.pad(x, ((0, n_p - n), (0, k_p - k)))
    if (k_p, m_p) != (k, m):
        r_main = jnp.pad(r_main, ((0, k_p - k), (0, m_p - m)))
    if m_p != m:
        r_last = jnp.pad(r_last, ((0, 0), (0, m_p - m)))

    grid = (n_p // tm, m_p // tn, k_p // tk)
    in_bytes = x.dtype.itemsize
    out_bytes = jnp.dtype(out_dtype).itemsize
    bytes_accessed = (
        (n_p * k_p + k_p * m_p + m_p) * in_bytes + n_p * m_p * out_bytes
    )

    out = pl.pallas_call(
        _matmul_bias_kernel,
        out_shape=jax.ShapeDtypeStruct((n_p, m_p), out_dtype),
        grid_spec=pltpu.PrefetchScalarGridSpec(
            num_scalar_prefetch=0,
            grid=grid,
            in_specs=[
                pl.BlockSpec((tm, tk), lambda i, j, kk: (i, kk)),
                pl.BlockSpec((tk, tn), lambda i, j, kk: (kk, j)),
                pl.BlockSpec((1, tn), lambda i, j, kk: (0, j)),
            ],
            out_specs=pl.BlockSpec((tm, tn), lambda i, j, kk: (i, j)),
            scratch_shapes=[pltpu.VMEM((tm, tn), jnp.float32)],
        ),
        compiler_params=pltpu.CompilerParams(
            dimension_semantics=("parallel", "parallel", "arbitrary"),
        ),
        cost_estimate=pl.CostEstimate(
            flops=2 * n_p * k_p * m_p,
            bytes_accessed=bytes_accessed,
            transcendentals=0,
        ),
    )(x, r_main, r_last)

    if (n_p, m_p) != (n, m):
        out = out[:n, :m]
    return out


def linear_layer_rotation(x, rotation_matrix, bias=0.0, compute_dtype=None):
    """Forward of LinearLayerRotation.

    x:                (N, D)
    rotation_matrix:  (D + 1, O) when the module was built with bias != 0
                      (last row pairs with the appended bias column),
                      (D,     O) when bias == 0.
    bias:             python scalar or traced 0-d value (folded into R's last
                      row, so no recompile per bias value and no concat of x).
    compute_dtype:    optional operand dtype for the matmul (e.g. jnp.bfloat16
                      on v6e/v7x for higher MXU throughput); accumulation is
                      always f32.
    """
    n, d = x.shape
    kr, m = rotation_matrix.shape
    out_dtype = x.dtype

    if kr == d + 1:
        # Fused bias: cat([x, bias], 1) @ R == x @ R[:D] + bias * R[D] (rank-1).
        r_main = rotation_matrix[:d, :]
        r_last = rotation_matrix[d:, :] * jnp.asarray(
            bias, dtype=rotation_matrix.dtype
        )
    elif kr == d:
        # bias == 0 path in the PyTorch module (no column appended).
        r_main = rotation_matrix
        r_last = jnp.zeros((1, m), dtype=rotation_matrix.dtype)
    else:
        raise ValueError(
            f"shape mismatch: x {x.shape} vs rotation_matrix "
            f"{rotation_matrix.shape}"
        )

    if compute_dtype is not None:
        x = x.astype(compute_dtype)
        r_main = r_main.astype(compute_dtype)
        r_last = r_last.astype(compute_dtype)

    return _pallas_matmul_bias(x, r_main, r_last, out_dtype)


if __name__ == "__main__":
    key = jax.random.PRNGKey(0)
    k_x, k_r, k_x2, k_r2 = jax.random.split(key, 4)

    # --- Small demo shape (consistent with the module's repo usage) ----------
    batch, in_features, out_features, bias = 8, 32, 32, 0.5
    x = jax.random.normal(k_x, (batch, in_features), dtype=jnp.float32)
    rotation_matrix = jax.random.normal(
        k_r, (in_features + 1, out_features), dtype=jnp.float32
    )

    out = linear_layer_rotation(x, rotation_matrix, bias=bias)
    jax.block_until_ready(out)

    x_aug = jnp.concatenate(
        [x, jnp.full((batch, 1), bias, dtype=x.dtype)], axis=1
    )
    ref = x_aug @ rotation_matrix
    assert out.shape == (batch, out_features)
    assert jnp.allclose(out, ref, atol=1e-4, rtol=1e-4), (
        "mismatch vs reference (small shape)"
    )

    # --- Larger shape exercising multiple grid tiles + bias == 0 path --------
    b2, d2, o2 = 160, 300, 200
    x2 = jax.random.normal(k_x2, (b2, d2), dtype=jnp.float32)
    rot2 = jax.random.normal(k_r2, (d2, o2), dtype=jnp.float32)
    out2 = linear_layer_rotation(x2, rot2, bias=0.0)
    jax.block_until_ready(out2)
    ref2 = x2 @ rot2
    assert out2.shape == (b2, o2)
    assert jnp.allclose(out2, ref2, atol=1e-3, rtol=1e-3), (
        "mismatch vs reference (multi-tile, bias==0)"
    )

    print("KERNEL_OK")
</pallas_src>

<mosaic_0001>
module attributes {stable_mosaic.version = 11 : i64} {
  func.func @_matmul_bias_kernel(%arg0: i32, %arg1: i32, %arg2: i32, %arg3: memref<8x128xf32, #tpu.memory_space<vmem>>, %arg4: memref<128x128xf32, #tpu.memory_space<vmem>>, %arg5: memref<1x128xf32, #tpu.memory_space<vmem>>, %arg6: memref<8x128xf32, #tpu.memory_space<vmem>>, %arg7: memref<8x128xf32, #tpu.memory_space<vmem>>) attributes {dimension_semantics = [#tpu.dimension_semantics<parallel>, #tpu.dimension_semantics<parallel>, #tpu.dimension_semantics<arbitrary>], iteration_bounds = array<i64: 1, 1, 1>, scalar_prefetch = 0 : i64, scratch_operands = 1 : i64, tpu.core_type = #tpu.core_type<tc>, window_params = [{transform_indices = @transform_0, window_bounds = array<i64: 8, 128>}, {transform_indices = @transform_1, window_bounds = array<i64: 128, 128>}, {transform_indices = @transform_2, window_bounds = array<i64: 1, 128>}, {transform_indices = @transform_3, window_bounds = array<i64: 8, 128>}]} {
    %c0_i32 = arith.constant 0 : i32
    %0 = arith.cmpi eq, %arg2, %c0_i32 : i32
    %1 = arith.extui %0 : i1 to i32
    %c0_i32_0 = arith.constant 0 : i32
    %2 = arith.cmpi ne, %1, %c0_i32_0 : i32
    scf.if %2 {
      %c0_10 = arith.constant 0 : index
      %c0_11 = arith.constant 0 : index
      %12 = vector.load %arg5[%c0_10, %c0_11] : memref<1x128xf32, #tpu.memory_space<vmem>>, vector<1x128xf32>
      %13 = vector.shape_cast %12 : vector<1x128xf32> to vector<1x128xf32>
      %14 = vector.broadcast %13 : vector<1x128xf32> to vector<8x128xf32>
      %c0_12 = arith.constant 0 : index
      %c0_13 = arith.constant 0 : index
      %15 = vector.load %arg7[%c0_12, %c0_13] : memref<8x128xf32, #tpu.memory_space<vmem>>, vector<8x128xf32>
      tpu.vector_store %arg7[%c0_12, %c0_13], %14 {strides = array<i32>} : memref<8x128xf32, #tpu.memory_space<vmem>>, vector<8x128xf32>,
    } else {
    }
    %c0 = arith.constant 0 : index
    %c0_1 = arith.constant 0 : index
    %3 = vector.load %arg7[%c0, %c0_1] : memref<8x128xf32, #tpu.memory_space<vmem>>, vector<8x128xf32>
    %c0_2 = arith.constant 0 : index
    %c0_3 = arith.constant 0 : index
    %4 = vector.load %arg3[%c0_2, %c0_3] : memref<8x128xf32, #tpu.memory_space<vmem>>, vector<8x128xf32>
    %c0_4 = arith.constant 0 : index
    %c0_5 = arith.constant 0 : index
    %5 = vector.load %arg4[%c0_4, %c0_5] : memref<128x128xf32, #tpu.memory_space<vmem>>, vector<128x128xf32>
    %cst = arith.constant dense<0.000000e+00> : vector<8x128xf32>
    %6 = tpu.matmul %4, %5, %cst {dimension_numbers = #tpu.dot_dimension_numbers<[1], [0], [0], [1], [0, 0, 1, 1], [], []>} : vector<8x128xf32>, vector<128x128xf32>, vector<8x128xf32> -> vector<8x128xf32>
    %7 = arith.addf %3, %6 : vector<8x128xf32>
    %c0_6 = arith.constant 0 : index
    %c0_7 = arith.constant 0 : index
    %8 = vector.load %arg7[%c0_6, %c0_7] : memref<8x128xf32, #tpu.memory_space<vmem>>, vector<8x128xf32>
    tpu.vector_store %arg7[%c0_6, %c0_7], %7 {strides = array<i32>} : memref<8x128xf32, #tpu.memory_space<vmem>>, vector<8x128xf32>,
    %c0_i32_8 = arith.constant 0 : i32
    %9 = arith.cmpi eq, %arg2, %c0_i32_8 : i32
    %10 = arith.extui %9 : i1 to i32
    %c0_i32_9 = arith.constant 0 : i32
    %11 = arith.cmpi ne, %10, %c0_i32_9 : i32
    scf.if %11 {
      %c0_10 = arith.constant 0 : index
      %c0_11 = arith.constant 0 : index
      %12 = vector.load %arg7[%c0_10, %c0_11] : memref<8x128xf32, #tpu.memory_space<vmem>>, vector<8x128xf32>
      %c0_12 = arith.constant 0 : index
      %c0_13 = arith.constant 0 : index
      %13 = vector.load %arg6[%c0_12, %c0_13] : memref<8x128xf32, #tpu.memory_space<vmem>>, vector<8x128xf32>
      tpu.vector_store %arg6[%c0_12, %c0_13], %12 {strides = array<i32>} : memref<8x128xf32, #tpu.memory_space<vmem>>, vector<8x128xf32>,
    } else {
    }
    return
  }
  func.func @transform_0(%arg0: i32, %arg1: i32, %arg2: i32) -> (i32, i32) {
    %c0_i32 = arith.constant 0 : i32
    return %arg0, %arg2 : i32, i32
  }
  func.func @transform_1(%arg0: i32, %arg1: i32, %arg2: i32) -> (i32, i32) {
    %c0_i32 = arith.constant 0 : i32
    return %arg2, %arg1 : i32, i32
  }
  func.func @transform_2(%arg0: i32, %arg1: i32, %arg2: i32) -> (i32, i32) {
    %c0_i32 = arith.constant 0 : i32
    %c0_i32_0 = arith.constant 0 : i32
    return %c0_i32, %arg1 : i32, i32
  }
  func.func @transform_3(%arg0: i32, %arg1: i32, %arg2: i32) -> (i32, i32) {
    %c0_i32 = arith.constant 0 : i32
    return %arg0, %arg1 : i32, i32
  }
}

</mosaic_0001>

<bundles_post_ra>
// kernel: tpu_custom_call.1
= control target key start
LH: loop header
LB: loop body
LE: loop exit
PB: predicated region body
PF: predicated region fallthrough
CT: control target
= control target key end

     0   :  { %8 = vsyncpa [#allocation4], 0  ;;  %s238_s0 = inlined_call_operand.hbm [shape: f32[8,128], index: 0, kind: input, shape index: {}]   ;;  %s239_s1 = inlined_call_operand.hbm [shape: f32[128,128], index: 1, kind: input, shape index: {}]   ;;  %s240_s2 = inlined_call_operand.vmem [shape: f32[1,128], index: 2, kind: input, shape index: {}]   ;;  %s241_s3 = inlined_call_operand.hbm [shape: f32[8,128], index: 3, kind: output, shape index: {}]  }
   0x1   :  { %9 = vsyncpa [#allocation7], 0 }
   0x2   :  { %10 = vsyncpa [#allocation5], 0  ;;  %s16_s14 = sshll.u32 %s238_s0, 4  ;;  %s201_s15 = smov [#allocation3]   ;;  %s17_s14 = int_to_ptr.hbm [resolvable:$true] %s16_s14 }
   0x3   :  { %s18_s16 = sshll.u32 %s201_s15, 4  ;;  %s26_s19 = sshll.u32 %s239_s1, 4  ;;  %s19_s16 = int_to_ptr.vmem [resolvable:$true] %s18_s16  ;;  %s27_s19 = int_to_ptr.hbm [resolvable:$true] %s26_s19 }
   0x4   :  { %21 = dma.hbm_to_vmem [thread:$0]  %s17_s14, 128, %s19_s16, [#allocation4]  }
   0x5   :  { %s202_s20 = smov [#allocation6]   ;;  %s203_s22 = smov 128  }
   0x6   :  { %s28_s21 = sshll.u32 %s202_s20, 4  ;;  %s204_s23 = smov 8   ;;  %s29_s21 = int_to_ptr.vmem [resolvable:$true] %s28_s21 }
   0x7   :  { %34 = dma.hbm_to_vmem [thread:$0]  %s27_s19, 2048, %s29_s21, [#allocation7], %s203_s22, %s203_s22, %s204_s23  }
   0x8   :  { %195 = dma.done.wait [#allocation4], 128  }
   0x9   :  { %196 = vsyncadd [#allocation4], 4294967168 }
   0xa   :  { %197 = dma.done.wait [#allocation7], 2048  }
   0xb   :  { %198 = vsyncadd [#allocation7], 4294965248  ;;  %v71_v0 = vld [vmem:[#allocation6 + $0x78] sm:$0xff]  ;;  %v70_v1 = vld [vmem:[#allocation6 + $0x70] sm:$0xff]  ;;  %s205_s24 = smov [#allocation8]   ;;  %s106_s28 = sshll.u32 %s241_s3, 4  ;;  %s107_s28 = int_to_ptr.hbm [resolvable:$true] %s106_s28 }
   0xc   :  { %72 = vmatpush.msra.mxu0 %v71_v0  ;;  %v69_v2 = vld [vmem:[#allocation6 + $0x68] sm:$0xff]  ;;  %v68_v3 = vld [vmem:[#allocation6 + $0x60] sm:$0xff]  ;;  %v67_v4 = vld [vmem:[#allocation6 + $0x58] sm:$0xff]  ;;  %s104_s25 = sshll.u32 %s205_s24, 4  ;;  %s105_s25 = int_to_ptr.vmem [resolvable:$true] %s104_s25 }
   0xd   :  { %v66_v5 = vld [vmem:[#allocation6 + $0x50] sm:$0xff]  ;;  %v65_v6 = vld [vmem:[#allocation6 + $0x48] sm:$0xff]  ;;  %v64_v7 = vld [vmem:[#allocation6 + $0x40] sm:$0xff] }
   0xe   :  { %73 = vmatpush.msra.mxu0 %v70_v1  ;;  %v63_v8 = vld [vmem:[#allocation6 + $0x38] sm:$0xff]  ;;  %v62_v9 = vld [vmem:[#allocation6 + $0x30] sm:$0xff]  ;;  %v61_v10 = vld [vmem:[#allocation6 + $0x28] sm:$0xff] }
   0xf   :  { %v60_v11 = vld [vmem:[#allocation6 + $0x20] sm:$0xff]  ;;  %v59_v12 = vld [vmem:[#allocation6 + $0x18] sm:$0xff]  ;;  %v58_v13 = vld [vmem:[#allocation6 + $0x10] sm:$0xff] }
  0x10   :  { %74 = vmatpush.msra.mxu0 %v69_v2  ;;  %v57_v14 = vld [vmem:[#allocation6 + $0x8] sm:$0xff]  ;;  %v56_v15 = vld [vmem:[#allocation6] sm:$0xff]  ;;  %v55_v16 = vld [vmem:[#allocation3] sm:$0xff] }
  0x11   :  { %v122_v17 = vld [vmem:[%s240_s2] ss:$0 sm:$0xff] }
  0x12   :  { %75 = vmatpush.msra.mxu0 %v68_v3 }
  0x14   :  { %76 = vmatpush.msra.mxu0 %v67_v4 }
  0x16   :  { %77 = vmatpush.msra.mxu0 %v66_v5 }
  0x18   :  { %78 = vmatpush.msra.mxu0 %v65_v6 }
  0x1a   :  { %79 = vmatpush.msra.mxu0 %v64_v7 }
  0x1c   :  { %80 = vmatpush.msra.mxu0 %v63_v8 }
  0x1e   :  { %81 = vmatpush.msra.mxu0 %v62_v9 }
  0x20   :  { %82 = vmatpush.msra.mxu0 %v61_v10 }
  0x22   :  { %83 = vmatpush.msra.mxu0 %v60_v11 }
  0x24   :  { %84 = vmatpush.msra.mxu0 %v59_v12 }
  0x26   :  { %85 = vmatpush.msra.mxu0 %v58_v13 }
  0x28   :  { %86 = vmatpush.msra.mxu0 %v57_v14 }
  0x2a   :  { %87 = vmatpush.msra.mxu0 %v56_v15 }
  0x2b   :  { %88 = vmatmul.f32.vlgmr.msra.gmra.mxu0 %v55_v16 }
  0xa8   :  { %v89_v18 = vpop.f32.mrf.mxu0 }
  0xa9   :  { %v92_v19 = vadd.f32 %v122_v17, %v89_v18 }
  0xab   :  { %98 = vst [vmem:[#allocation8] sm:$0xff] %v92_v19 }
  0xac   :  { %109 = dma.vmem_to_hbm [thread:$0]  %s105_s25, 128, %s107_s28, [#allocation5]  }
  0xad   :  { %199 = dma.done.wait [#allocation5], 128  }
  0xae   :  { %200 = vsyncadd [#allocation5], 4294967168 }
  0xaf   :  { %114 = vsyncpa [#allocation4], 1 }
  0xb0   :  { %115 = vsyncpa [#allocation7], 1 }
  0xb1   :  { %116 = vsyncpa [#allocation5], 1 }

</bundles_post_ra>
